<compile_context>
chip_gen: v5e
topology: v5e:2x2
jax: 0.10.0
libtpu: 0.0.40
codegen_flags: <defaults>
</compile_context>

<pallas_src>
import functools

import jax
import jax.numpy as jnp
from jax.experimental import pallas as pl
from jax.experimental.pallas import tpu as pltpu


def _lstm_hn_kernel(x2d_ref, params_ref, hn_ref, *, T, B, F, H):
    """Single-layer LSTM; writes the final hidden state hn of shape (B, H).

    x2d_ref    : (T*B, F)     time-major input, (T, B) pre-flattened in wrapper
    params_ref : (F+H+1, 4H)  rows [0:F]     = W_ih^T
                              rows [F:F+H]   = W_hh^T
                              row  [F+H]     = b_ih + b_hh
                 The g-gate column block (cols [2H:3H]) is pre-scaled by 2 so
                 tanh(g) can be recovered from the single sigmoid pass.
    """
    x2d = x2d_ref[...]                                  # (T*B, F)
    params = params_ref[...]                            # (F+H+1, 4H)

    wih_t = params[0:F, :]                              # (F, 4H)
    whh_t = params[F:F + H, :]                          # (H, 4H)
    b_row = params[F + H:F + H + 1, :]                  # (1, 4H)

    # ---- Input projection + bias: F VPU broadcast-FMAs, no MXU. ----
    xg = jnp.broadcast_to(b_row, (T * B, 4 * H))
    for f in range(F):
        xg = xg + x2d[:, f:f + 1] * wih_t[f:f + 1, :]   # (T*B,1)*(1,4H) -> (T*B,4H)

    # Pre-slice per-timestep gate blocks off the serial chain.
    xg_steps = [xg[t * B:(t + 1) * B, :] for t in range(T)]

    # Hoist the loop-invariant recurrent-weight broadcast (H == 1 fast path).
    whh_b = jnp.broadcast_to(whh_t, (B, 4 * H)) if H == 1 else None

    h = jnp.zeros((B, H), jnp.float32)
    c = jnp.zeros((B, H), jnp.float32)
    rec = jnp.zeros((B, 4 * H), jnp.float32)            # h0 == 0  =>  recurrent term 0

    # ---- Serial recurrence, fully unrolled (T static & small). ----
    for t in range(T):
        gates = xg_steps[t] + rec                       # (B, 4H), PyTorch order (i,f,g,o)

        # Single EUP push per step: one sigmoid over the whole gate block.
        sg = jax.nn.sigmoid(gates)
        i_g = sg[:, 0 * H:1 * H]
        f_g = sg[:, 1 * H:2 * H]
        g_g = 2.0 * sg[:, 2 * H:3 * H] - 1.0            # == tanh(original g pre-act)
        o_g = sg[:, 3 * H:4 * H]

        c = f_g * c + i_g * g_g
        tanh_c = jnp.tanh(c)

        last = (t == T - 1)
        if H == 1:
            if last:
                h = o_g * tanh_c                        # final hidden state
            else:
                # o_w overlaps with the c update / tanh(c); only one multiply +
                # the gate add remain between tanh(c) and the next sigmoid.
                o_w = o_g * whh_b                       # (B,1)*(B,4H) -> (B,4H)
                rec = o_w * tanh_c                      # == (o_g*tanh(c)) @ W_hh^T
        else:
            h = o_g * tanh_c
            if not last:
                rec = jnp.dot(h, whh_t, preferred_element_type=jnp.float32)

    hn_ref[...] = h.astype(hn_ref.dtype)


def pack_lstm_params(w_ih, w_hh, b_ih, b_hh):
    """One-time parameter prep — do this once per model and cache the result.

    Transposes W_ih / W_hh, combines the biases, pre-scales the g-gate column
    by 2 (enables the tanh-as-sigmoid trick) and packs everything into a
    single (F+H+1, 4H) f32 array so the kernel takes 2 inputs instead of 4.
    """
    H4, F = w_ih.shape
    H = H4 // 4
    assert w_hh.shape == (4 * H, H)
    wih_t = jnp.transpose(w_ih).astype(jnp.float32)             # (F, 4H)
    whh_t = jnp.transpose(w_hh).astype(jnp.float32)             # (H, 4H)
    b = (b_ih + b_hh).reshape(1, 4 * H).astype(jnp.float32)     # (1, 4H)
    packed = jnp.concatenate([wih_t, whh_t, b], axis=0)         # (F+H+1, 4H)
    g_scale = jnp.ones((4 * H,), jnp.float32).at[2 * H:3 * H].set(2.0)
    return packed * g_scale[None, :]


@jax.jit
def lstm_hn_packed(x, packed_params):
    """Hot path: takes pre-packed params. Returns hn.view(-1, H) == (batch, H)."""
    T, B, F = x.shape
    n_rows, H4 = packed_params.shape
    H = H4 // 4
    assert n_rows == F + H + 1

    x2d = x.astype(jnp.float32).reshape(T * B, F)               # layout glue only

    vmem = pltpu.MemorySpace.VMEM
    kernel = functools.partial(_lstm_hn_kernel, T=T, B=B, F=F, H=H)
    cost = pl.CostEstimate(
        flops=2 * T * B * F * 4 * H + 10 * T * B * 4 * H,
        transcendentals=T * B * (4 * H + H),
        bytes_accessed=4 * (T * B * F + n_rows * 4 * H + B * H),
    )
    hn = pl.pallas_call(
        kernel,
        out_shape=jax.ShapeDtypeStruct((B, H), jnp.float32),
        in_specs=[
            pl.BlockSpec(memory_space=vmem),   # x (flattened time-major)
            pl.BlockSpec(memory_space=vmem),   # packed params
        ],
        out_specs=pl.BlockSpec(memory_space=vmem),
        cost_estimate=cost,
    )(x2d, packed_params)
    # PyTorch hn is (num_layers=1, B, H); .view(-1, H) -> (B, H): already that.
    return hn


def lstm_hn(x, w_ih, w_hh, b_ih, b_hh):
    """Convenience one-shot wrapper (pack + run). Cache pack_lstm_params in real use."""
    return lstm_hn_packed(x, pack_lstm_params(w_ih, w_hh, b_ih, b_hh))


def _reference_lstm_hn(x, w_ih, w_hh, b_ih, b_hh):
    """Pure-JAX reference for correctness checking."""
    T, B, F = x.shape
    H = w_hh.shape[1]
    h = jnp.zeros((B, H), jnp.float32)
    c = jnp.zeros((B, H), jnp.float32)
    for t in range(T):
        g = x[t] @ w_ih.T + h @ w_hh.T + b_ih + b_hh
        i = jax.nn.sigmoid(g[:, 0 * H:1 * H])
        f = jax.nn.sigmoid(g[:, 1 * H:2 * H])
        gg = jnp.tanh(g[:, 2 * H:3 * H])
        o = jax.nn.sigmoid(g[:, 3 * H:4 * H])
        c = f * c + i * gg
        h = o * jnp.tanh(c)
    return h


if __name__ == "__main__":
    # Small shapes consistent with the module: seq=8, batch=2, n_features=4, hidden=1.
    T, B, F, H = 8, 2, 4, 1

    key = jax.random.PRNGKey(0)
    kx, kwih, kwhh, kbih, kbhh = jax.random.split(key, 5)

    x = jax.random.normal(kx, (T, B, F), dtype=jnp.float32)

    # PyTorch LSTM init: U(-1/sqrt(H), 1/sqrt(H)); with H=1 this is U(-1, 1).
    bound = 1.0 / jnp.sqrt(jnp.float32(H))
    w_ih = jax.random.uniform(kwih, (4 * H, F), jnp.float32, -bound, bound)
    w_hh = jax.random.uniform(kwhh, (4 * H, H), jnp.float32, -bound, bound)
    b_ih = jax.random.uniform(kbih, (4 * H,), jnp.float32, -bound, bound)
    b_hh = jax.random.uniform(kbhh, (4 * H,), jnp.float32, -bound, bound)

    # Pack once (cacheable), run the hot path.
    packed = pack_lstm_params(w_ih, w_hh, b_ih, b_hh)
    hn = lstm_hn_packed(x, packed)
    hn = jax.block_until_ready(hn)

    ref = _reference_lstm_hn(x, w_ih, w_hh, b_ih, b_hh)
    assert hn.shape == (B, H), hn.shape
    assert jnp.allclose(hn, ref, atol=1e-5, rtol=1e-5), (hn, ref)

    print("KERNEL_OK")
</pallas_src>

<mosaic_0001>
module attributes {stable_mosaic.version = 11 : i64} {
  func.func @_lstm_hn_kernel(%arg0: memref<16x4xf32, #tpu.memory_space<vmem>>, %arg1: memref<6x4xf32, #tpu.memory_space<vmem>>, %arg2: memref<2x1xf32, #tpu.memory_space<vmem>>) attributes {dimension_semantics = [], scalar_prefetch = 0 : i64, scratch_operands = 0 : i64, tpu.core_type = #tpu.core_type<tc>} {
    %c0 = arith.constant 0 : index
    %c0_0 = arith.constant 0 : index
    %0 = vector.load %arg0[%c0, %c0_0] : memref<16x4xf32, #tpu.memory_space<vmem>>, vector<16x4xf32>
    %c0_1 = arith.constant 0 : index
    %c0_2 = arith.constant 0 : index
    %1 = vector.load %arg1[%c0_1, %c0_2] : memref<6x4xf32, #tpu.memory_space<vmem>>, vector<6x4xf32>
    %2 = vector.extract_strided_slice %1 {offsets = [0, 0], sizes = [4, 4], strides = [1, 1]} : vector<6x4xf32> to vector<4x4xf32>
    %3 = vector.extract_strided_slice %1 {offsets = [4, 0], sizes = [1, 4], strides = [1, 1]} : vector<6x4xf32> to vector<1x4xf32>
    %4 = vector.extract_strided_slice %1 {offsets = [5, 0], sizes = [1, 4], strides = [1, 1]} : vector<6x4xf32> to vector<1x4xf32>
    %5 = vector.shape_cast %4 : vector<1x4xf32> to vector<1x4xf32>
    %6 = vector.broadcast %5 : vector<1x4xf32> to vector<16x4xf32>
    %7 = vector.extract_strided_slice %0 {offsets = [0, 0], sizes = [16, 1], strides = [1, 1]} : vector<16x4xf32> to vector<16x1xf32>
    %8 = vector.extract_strided_slice %2 {offsets = [0, 0], sizes = [1, 4], strides = [1, 1]} : vector<4x4xf32> to vector<1x4xf32>
    %9 = vector.broadcast %7 : vector<16x1xf32> to vector<16x4xf32>
    %10 = vector.broadcast %8 : vector<1x4xf32> to vector<16x4xf32>
    %11 = arith.mulf %9, %10 : vector<16x4xf32>
    %12 = arith.addf %6, %11 : vector<16x4xf32>
    %13 = vector.extract_strided_slice %0 {offsets = [0, 1], sizes = [16, 1], strides = [1, 1]} : vector<16x4xf32> to vector<16x1xf32>
    %14 = vector.extract_strided_slice %2 {offsets = [1, 0], sizes = [1, 4], strides = [1, 1]} : vector<4x4xf32> to vector<1x4xf32>
    %15 = vector.broadcast %13 : vector<16x1xf32> to vector<16x4xf32>
    %16 = vector.broadcast %14 : vector<1x4xf32> to vector<16x4xf32>
    %17 = arith.mulf %15, %16 : vector<16x4xf32>
    %18 = arith.addf %12, %17 : vector<16x4xf32>
    %19 = vector.extract_strided_slice %0 {offsets = [0, 2], sizes = [16, 1], strides = [1, 1]} : vector<16x4xf32> to vector<16x1xf32>
    %20 = vector.extract_strided_slice %2 {offsets = [2, 0], sizes = [1, 4], strides = [1, 1]} : vector<4x4xf32> to vector<1x4xf32>
    %21 = vector.broadcast %19 : vector<16x1xf32> to vector<16x4xf32>
    %22 = vector.broadcast %20 : vector<1x4xf32> to vector<16x4xf32>
    %23 = arith.mulf %21, %22 : vector<16x4xf32>
    %24 = arith.addf %18, %23 : vector<16x4xf32>
    %25 = vector.extract_strided_slice %0 {offsets = [0, 3], sizes = [16, 1], strides = [1, 1]} : vector<16x4xf32> to vector<16x1xf32>
    %26 = vector.extract_strided_slice %2 {offsets = [3, 0], sizes = [1, 4], strides = [1, 1]} : vector<4x4xf32> to vector<1x4xf32>
    %27 = vector.broadcast %25 : vector<16x1xf32> to vector<16x4xf32>
    %28 = vector.broadcast %26 : vector<1x4xf32> to vector<16x4xf32>
    %29 = arith.mulf %27, %28 : vector<16x4xf32>
    %30 = arith.addf %24, %29 : vector<16x4xf32>
    %31 = vector.extract_strided_slice %30 {offsets = [0, 0], sizes = [2, 4], strides = [1, 1]} : vector<16x4xf32> to vector<2x4xf32>
    %32 = vector.extract_strided_slice %30 {offsets = [2, 0], sizes = [2, 4], strides = [1, 1]} : vector<16x4xf32> to vector<2x4xf32>
    %33 = vector.extract_strided_slice %30 {offsets = [4, 0], sizes = [2, 4], strides = [1, 1]} : vector<16x4xf32> to vector<2x4xf32>
    %34 = vector.extract_strided_slice %30 {offsets = [6, 0], sizes = [2, 4], strides = [1, 1]} : vector<16x4xf32> to vector<2x4xf32>
    %35 = vector.extract_strided_slice %30 {offsets = [8, 0], sizes = [2, 4], strides = [1, 1]} : vector<16x4xf32> to vector<2x4xf32>
    %36 = vector.extract_strided_slice %30 {offsets = [10, 0], sizes = [2, 4], strides = [1, 1]} : vector<16x4xf32> to vector<2x4xf32>
    %37 = vector.extract_strided_slice %30 {offsets = [12, 0], sizes = [2, 4], strides = [1, 1]} : vector<16x4xf32> to vector<2x4xf32>
    %38 = vector.extract_strided_slice %30 {offsets = [14, 0], sizes = [2, 4], strides = [1, 1]} : vector<16x4xf32> to vector<2x4xf32>
    %39 = vector.shape_cast %3 : vector<1x4xf32> to vector<1x4xf32>
    %40 = vector.broadcast %39 : vector<1x4xf32> to vector<2x4xf32>
    %cst = arith.constant 0.000000e+00 : f32
    %41 = vector.broadcast %cst : f32 to vector<2x1xf32>
    %cst_3 = arith.constant 0.000000e+00 : f32
    %42 = vector.broadcast %cst_3 : f32 to vector<2x4xf32>
    %43 = arith.addf %31, %42 : vector<2x4xf32>
    %44 = arith.negf %43 : vector<2x4xf32>
    %45 = math.exp %44 : vector<2x4xf32>
    %cst_4 = arith.constant 1.000000e+00 : f32
    %46 = vector.broadcast %cst_4 : f32 to vector<2x4xf32>
    %47 = arith.addf %46, %45 : vector<2x4xf32>
    %48 = arith.divf %46, %47 : vector<2x4xf32>
    %49 = vector.extract_strided_slice %48 {offsets = [0, 0], sizes = [2, 1], strides = [1, 1]} : vector<2x4xf32> to vector<2x1xf32>
    %50 = vector.extract_strided_slice %48 {offsets = [0, 1], sizes = [2, 1], strides = [1, 1]} : vector<2x4xf32> to vector<2x1xf32>
    %51 = vector.extract_strided_slice %48 {offsets = [0, 2], sizes = [2, 1], strides = [1, 1]} : vector<2x4xf32> to vector<2x1xf32>
    %cst_5 = arith.constant 2.000000e+00 : f32
    %52 = vector.broadcast %cst_5 : f32 to vector<2x1xf32>
    %53 = arith.mulf %52, %51 : vector<2x1xf32>
    %cst_6 = arith.constant 1.000000e+00 : f32
    %54 = vector.broadcast %cst_6 : f32 to vector<2x1xf32>
    %55 = arith.subf %53, %54 : vector<2x1xf32>
    %56 = vector.extract_strided_slice %48 {offsets = [0, 3], sizes = [2, 1], strides = [1, 1]} : vector<2x4xf32> to vector<2x1xf32>
    %57 = arith.mulf %50, %41 : vector<2x1xf32>
    %58 = arith.mulf %49, %55 : vector<2x1xf32>
    %59 = arith.addf %57, %58 : vector<2x1xf32>
    %60 = math.tanh %59 : vector<2x1xf32>
    %61 = vector.broadcast %56 : vector<2x1xf32> to vector<2x4xf32>
    %62 = arith.mulf %61, %40 : vector<2x4xf32>
    %63 = vector.broadcast %60 : vector<2x1xf32> to vector<2x4xf32>
    %64 = arith.mulf %62, %63 : vector<2x4xf32>
    %65 = arith.addf %32, %64 : vector<2x4xf32>
    %66 = arith.negf %65 : vector<2x4xf32>
    %67 = math.exp %66 : vector<2x4xf32>
    %cst_7 = arith.constant 1.000000e+00 : f32
    %68 = vector.broadcast %cst_7 : f32 to vector<2x4xf32>
    %69 = arith.addf %68, %67 : vector<2x4xf32>
    %70 = arith.divf %68, %69 : vector<2x4xf32>
    %71 = vector.extract_strided_slice %70 {offsets = [0, 0], sizes = [2, 1], strides = [1, 1]} : vector<2x4xf32> to vector<2x1xf32>
    %72 = vector.extract_strided_slice %70 {offsets = [0, 1], sizes = [2, 1], strides = [1, 1]} : vector<2x4xf32> to vector<2x1xf32>
    %73 = vector.extract_strided_slice %70 {offsets = [0, 2], sizes = [2, 1], strides = [1, 1]} : vector<2x4xf32> to vector<2x1xf32>
    %cst_8 = arith.constant 2.000000e+00 : f32
    %74 = vector.broadcast %cst_8 : f32 to vector<2x1xf32>
    %75 = arith.mulf %74, %73 : vector<2x1xf32>
    %cst_9 = arith.constant 1.000000e+00 : f32
    %76 = vector.broadcast %cst_9 : f32 to vector<2x1xf32>
    %77 = arith.subf %75, %76 : vector<2x1xf32>
    %78 = vector.extract_strided_slice %70 {offsets = [0, 3], sizes = [2, 1], strides = [1, 1]} : vector<2x4xf32> to vector<2x1xf32>
    %79 = arith.mulf %72, %59 : vector<2x1xf32>
    %80 = arith.mulf %71, %77 : vector<2x1xf32>
    %81 = arith.addf %79, %80 : vector<2x1xf32>
    %82 = math.tanh %81 : vector<2x1xf32>
    %83 = vector.broadcast %78 : vector<2x1xf32> to vector<2x4xf32>
    %84 = arith.mulf %83, %40 : vector<2x4xf32>
    %85 = vector.broadcast %82 : vector<2x1xf32> to vector<2x4xf32>
    %86 = arith.mulf %84, %85 : vector<2x4xf32>
    %87 = arith.addf %33, %86 : vector<2x4xf32>
    %88 = arith.negf %87 : vector<2x4xf32>
    %89 = math.exp %88 : vector<2x4xf32>
    %cst_10 = arith.constant 1.000000e+00 : f32
    %90 = vector.broadcast %cst_10 : f32 to vector<2x4xf32>
    %91 = arith.addf %90, %89 : vector<2x4xf32>
    %92 = arith.divf %90, %91 : vector<2x4xf32>
    %93 = vector.extract_strided_slice %92 {offsets = [0, 0], sizes = [2, 1], strides = [1, 1]} : vector<2x4xf32> to vector<2x1xf32>
    %94 = vector.extract_strided_slice %92 {offsets = [0, 1], sizes = [2, 1], strides = [1, 1]} : vector<2x4xf32> to vector<2x1xf32>
    %95 = vector.extract_strided_slice %92 {offsets = [0, 2], sizes = [2, 1], strides = [1, 1]} : vector<2x4xf32> to vector<2x1xf32>
    %cst_11 = arith.constant 2.000000e+00 : f32
    %96 = vector.broadcast %cst_11 : f32 to vector<2x1xf32>
    %97 = arith.mulf %96, %95 : vector<2x1xf32>
    %cst_12 = arith.constant 1.000000e+00 : f32
    %98 = vector.broadcast %cst_12 : f32 to vector<2x1xf32>
    %99 = arith.subf %97, %98 : vector<2x1xf32>
    %100 = vector.extract_strided_slice %92 {offsets = [0, 3], sizes = [2, 1], strides = [1, 1]} : vector<2x4xf32> to vector<2x1xf32>
    %101 = arith.mulf %94, %81 : vector<2x1xf32>
    %102 = arith.mulf %93, %99 : vector<2x1xf32>
    %103 = arith.addf %101, %102 : vector<2x1xf32>
    %104 = math.tanh %103 : vector<2x1xf32>
    %105 = vector.broadcast %100 : vector<2x1xf32> to vector<2x4xf32>
    %106 = arith.mulf %105, %40 : vector<2x4xf32>
    %107 = vector.broadcast %104 : vector<2x1xf32> to vector<2x4xf32>
    %108 = arith.mulf %106, %107 : vector<2x4xf32>
    %109 = arith.addf %34, %108 : vector<2x4xf32>
    %110 = arith.negf %109 : vector<2x4xf32>
    %111 = math.exp %110 : vector<2x4xf32>
    %cst_13 = arith.constant 1.000000e+00 : f32
    %112 = vector.broadcast %cst_13 : f32 to vector<2x4xf32>
    %113 = arith.addf %112, %111 : vector<2x4xf32>
    %114 = arith.divf %112, %113 : vector<2x4xf32>
    %115 = vector.extract_strided_slice %114 {offsets = [0, 0], sizes = [2, 1], strides = [1, 1]} : vector<2x4xf32> to vector<2x1xf32>
    %116 = vector.extract_strided_slice %114 {offsets = [0, 1], sizes = [2, 1], strides = [1, 1]} : vector<2x4xf32> to vector<2x1xf32>
    %117 = vector.extract_strided_slice %114 {offsets = [0, 2], sizes = [2, 1], strides = [1, 1]} : vector<2x4xf32> to vector<2x1xf32>
    %cst_14 = arith.constant 2.000000e+00 : f32
    %118 = vector.broadcast %cst_14 : f32 to vector<2x1xf32>
    %119 = arith.mulf %118, %117 : vector<2x1xf32>
    %cst_15 = arith.constant 1.000000e+00 : f32
    %120 = vector.broadcast %cst_15 : f32 to vector<2x1xf32>
    %121 = arith.subf %119, %120 : vector<2x1xf32>
    %122 = vector.extract_strided_slice %114 {offsets = [0, 3], sizes = [2, 1], strides = [1, 1]} : vector<2x4xf32> to vector<2x1xf32>
    %123 = arith.mulf %116, %103 : vector<2x1xf32>
    %124 = arith.mulf %115, %121 : vector<2x1xf32>
    %125 = arith.addf %123, %124 : vector<2x1xf32>
    %126 = math.tanh %125 : vector<2x1xf32>
    %127 = vector.broadcast %122 : vector<2x1xf32> to vector<2x4xf32>
    %128 = arith.mulf %127, %40 : vector<2x4xf32>
    %129 = vector.broadcast %126 : vector<2x1xf32> to vector<2x4xf32>
    %130 = arith.mulf %128, %129 : vector<2x4xf32>
    %131 = arith.addf %35, %130 : vector<2x4xf32>
    %132 = arith.negf %131 : vector<2x4xf32>
    %133 = math.exp %132 : vector<2x4xf32>
    %cst_16 = arith.constant 1.000000e+00 : f32
    %134 = vector.broadcast %cst_16 : f32 to vector<2x4xf32>
    %135 = arith.addf %134, %133 : vector<2x4xf32>
    %136 = arith.divf %134, %135 : vector<2x4xf32>
    %137 = vector.extract_strided_slice %136 {offsets = [0, 0], sizes = [2, 1], strides = [1, 1]} : vector<2x4xf32> to vector<2x1xf32>
    %138 = vector.extract_strided_slice %136 {offsets = [0, 1], sizes = [2, 1], strides = [1, 1]} : vector<2x4xf32> to vector<2x1xf32>
    %139 = vector.extract_strided_slice %136 {offsets = [0, 2], sizes = [2, 1], strides = [1, 1]} : vector<2x4xf32> to vector<2x1xf32>
    %cst_17 = arith.constant 2.000000e+00 : f32
    %140 = vector.broadcast %cst_17 : f32 to vector<2x1xf32>
    %141 = arith.mulf %140, %139 : vector<2x1xf32>
    %cst_18 = arith.constant 1.000000e+00 : f32
    %142 = vector.broadcast %cst_18 : f32 to vector<2x1xf32>
    %143 = arith.subf %141, %142 : vector<2x1xf32>
    %144 = vector.extract_strided_slice %136 {offsets = [0, 3], sizes = [2, 1], strides = [1, 1]} : vector<2x4xf32> to vector<2x1xf32>
    %145 = arith.mulf %138, %125 : vector<2x1xf32>
    %146 = arith.mulf %137, %143 : vector<2x1xf32>
    %147 = arith.addf %145, %146 : vector<2x1xf32>
    %148 = math.tanh %147 : vector<2x1xf32>
    %149 = vector.broadcast %144 : vector<2x1xf32> to vector<2x4xf32>
    %150 = arith.mulf %149, %40 : vector<2x4xf32>
    %151 = vector.broadcast %148 : vector<2x1xf32> to vector<2x4xf32>
    %152 = arith.mulf %150, %151 : vector<2x4xf32>
    %153 = arith.addf %36, %152 : vector<2x4xf32>
    %154 = arith.negf %153 : vector<2x4xf32>
    %155 = math.exp %154 : vector<2x4xf32>
    %cst_19 = arith.constant 1.000000e+00 : f32
    %156 = vector.broadcast %cst_19 : f32 to vector<2x4xf32>
    %157 = arith.addf %156, %155 : vector<2x4xf32>
    %158 = arith.divf %156, %157 : vector<2x4xf32>
    %159 = vector.extract_strided_slice %158 {offsets = [0, 0], sizes = [2, 1], strides = [1, 1]} : vector<2x4xf32> to vector<2x1xf32>
    %160 = vector.extract_strided_slice %158 {offsets = [0, 1], sizes = [2, 1], strides = [1, 1]} : vector<2x4xf32> to vector<2x1xf32>
    %161 = vector.extract_strided_slice %158 {offsets = [0, 2], sizes = [2, 1], strides = [1, 1]} : vector<2x4xf32> to vector<2x1xf32>
    %cst_20 = arith.constant 2.000000e+00 : f32
    %162 = vector.broadcast %cst_20 : f32 to vector<2x1xf32>
    %163 = arith.mulf %162, %161 : vector<2x1xf32>
    %cst_21 = arith.constant 1.000000e+00 : f32
    %164 = vector.broadcast %cst_21 : f32 to vector<2x1xf32>
    %165 = arith.subf %163, %164 : vector<2x1xf32>
    %166 = vector.extract_strided_slice %158 {offsets = [0, 3], sizes = [2, 1], strides = [1, 1]} : vector<2x4xf32> to vector<2x1xf32>
    %167 = arith.mulf %160, %147 : vector<2x1xf32>
    %168 = arith.mulf %159, %165 : vector<2x1xf32>
    %169 = arith.addf %167, %168 : vector<2x1xf32>
    %170 = math.tanh %169 : vector<2x1xf32>
    %171 = vector.broadcast %166 : vector<2x1xf32> to vector<2x4xf32>
    %172 = arith.mulf %171, %40 : vector<2x4xf32>
    %173 = vector.broadcast %170 : vector<2x1xf32> to vector<2x4xf32>
    %174 = arith.mulf %172, %173 : vector<2x4xf32>
    %175 = arith.addf %37, %174 : vector<2x4xf32>
    %176 = arith.negf %175 : vector<2x4xf32>
    %177 = math.exp %176 : vector<2x4xf32>
    %cst_22 = arith.constant 1.000000e+00 : f32
    %178 = vector.broadcast %cst_22 : f32 to vector<2x4xf32>
    %179 = arith.addf %178, %177 : vector<2x4xf32>
    %180 = arith.divf %178, %179 : vector<2x4xf32>
    %181 = vector.extract_strided_slice %180 {offsets = [0, 0], sizes = [2, 1], strides = [1, 1]} : vector<2x4xf32> to vector<2x1xf32>
    %182 = vector.extract_strided_slice %180 {offsets = [0, 1], sizes = [2, 1], strides = [1, 1]} : vector<2x4xf32> to vector<2x1xf32>
    %183 = vector.extract_strided_slice %180 {offsets = [0, 2], sizes = [2, 1], strides = [1, 1]} : vector<2x4xf32> to vector<2x1xf32>
    %cst_23 = arith.constant 2.000000e+00 : f32
    %184 = vector.broadcast %cst_23 : f32 to vector<2x1xf32>
    %185 = arith.mulf %184, %183 : vector<2x1xf32>
    %cst_24 = arith.constant 1.000000e+00 : f32
    %186 = vector.broadcast %cst_24 : f32 to vector<2x1xf32>
    %187 = arith.subf %185, %186 : vector<2x1xf32>
    %188 = vector.extract_strided_slice %180 {offsets = [0, 3], sizes = [2, 1], strides = [1, 1]} : vector<2x4xf32> to vector<2x1xf32>
    %189 = arith.mulf %182, %169 : vector<2x1xf32>
    %190 = arith.mulf %181, %187 : vector<2x1xf32>
    %191 = arith.addf %189, %190 : vector<2x1xf32>
    %192 = math.tanh %191 : vector<2x1xf32>
    %193 = vector.broadcast %188 : vector<2x1xf32> to vector<2x4xf32>
    %194 = arith.mulf %193, %40 : vector<2x4xf32>
    %195 = vector.broadcast %192 : vector<2x1xf32> to vector<2x4xf32>
    %196 = arith.mulf %194, %195 : vector<2x4xf32>
    %197 = arith.addf %38, %196 : vector<2x4xf32>
    %198 = arith.negf %197 : vector<2x4xf32>
    %199 = math.exp %198 : vector<2x4xf32>
    %cst_25 = arith.constant 1.000000e+00 : f32
    %200 = vector.broadcast %cst_25 : f32 to vector<2x4xf32>
    %201 = arith.addf %200, %199 : vector<2x4xf32>
    %202 = arith.divf %200, %201 : vector<2x4xf32>
    %203 = vector.extract_strided_slice %202 {offsets = [0, 0], sizes = [2, 1], strides = [1, 1]} : vector<2x4xf32> to vector<2x1xf32>
    %204 = vector.extract_strided_slice %202 {offsets = [0, 1], sizes = [2, 1], strides = [1, 1]} : vector<2x4xf32> to vector<2x1xf32>
    %205 = vector.extract_strided_slice %202 {offsets = [0, 2], sizes = [2, 1], strides = [1, 1]} : vector<2x4xf32> to vector<2x1xf32>
    %cst_26 = arith.constant 2.000000e+00 : f32
    %206 = vector.broadcast %cst_26 : f32 to vector<2x1xf32>
    %207 = arith.mulf %206, %205 : vector<2x1xf32>
    %cst_27 = arith.constant 1.000000e+00 : f32
    %208 = vector.broadcast %cst_27 : f32 to vector<2x1xf32>
    %209 = arith.subf %207, %208 : vector<2x1xf32>
    %210 = vector.extract_strided_slice %202 {offsets = [0, 3], sizes = [2, 1], strides = [1, 1]} : vector<2x4xf32> to vector<2x1xf32>
    %211 = arith.mulf %204, %191 : vector<2x1xf32>
    %212 = arith.mulf %203, %209 : vector<2x1xf32>
    %213 = arith.addf %211, %212 : vector<2x1xf32>
    %214 = math.tanh %213 : vector<2x1xf32>
    %215 = arith.mulf %210, %214 : vector<2x1xf32>
    %c0_28 = arith.constant 0 : index
    %c0_29 = arith.constant 0 : index
    %216 = vector.load %arg2[%c0_28, %c0_29] : memref<2x1xf32, #tpu.memory_space<vmem>>, vector<2x1xf32>
    tpu.vector_store %arg2[%c0_28, %c0_29], %215 {strides = array<i32>} : memref<2x1xf32, #tpu.memory_space<vmem>>, vector<2x1xf32>,
    return
  }
}

</mosaic_0001>

<bundles_post_ra>
// kernel: lstm_hn_packed.1
= control target key start
LH: loop header
LB: loop body
LE: loop exit
PB: predicated region body
PF: predicated region fallthrough
CT: control target
= control target key end

     0   :  { %v573_v0 = vmov 0   ;;  %v574_v2 = vmov 2   ;;  %v575_v3 = vmov 1   ;;  %v576_v4 = vmov 3   ;;  %s578_s13 = smov 1   ;;  %s580_s16 = smov 125   ;;  %s691_s0 = inlined_call_operand.vmem [shape: f32[16,4], index: 0, kind: input, shape index: {}]   ;;  %s692_s1 = inlined_call_operand.vmem [shape: f32[6,4], index: 1, kind: input, shape index: {}]   ;;  %s693_s2 = inlined_call_operand.vmem [shape: f32[2,1], index: 2, kind: output, shape index: {}]  }
   0x1   :  { %507 = vset.pattern.permute.xlu0 %v573_v0  ;;  %v11_v1 = vld [vmem:[%s691_s0] sm:$0xff]  ;;  %509 = vset.pattern.permute.xlu1 %v574_v2 }
   0x2   :  { %17 = vperm.xlu0 %507, %v11_v1   ;;  %44 = vperm.xlu1 %509, %v11_v1   ;;  %v607_v5 = vld [vmem:[%s692_s1] sm:$0x3f]  ;;  %s577_s1 = smov 126  }
   0x3   :  { %511 = vset.pattern.permute.xlu2 %v575_v3  ;;  %v25_v8 = vperm.slane %v607_v5, 0  ;;  %v14_v9 = vperm.slane %v607_v5, 5  ;;  %v38_v11 = vperm.slane %v607_v5, 1  ;;  %v51_v12 = vperm.slane %v607_v5, 2 }
   0x4   :  { %v64_v13 = vperm.slane %v607_v5, 3  ;;  %v632_v44 = vperm.slane %v607_v5, 4 }
   0xa   :  { %508 = vset.pattern.permute.xlu0 %v575_v3  ;;  %510 = vset.pattern.permute.xlu1 %v576_v4 }
   0xb   :  { %31 = vperm.xlu0 %508, %v11_v1   ;;  %57 = vperm.xlu1 %510, %v11_v1  }
  0x74   :  { %v18_v6 = vpop.permute.xlu0 %17  ;;  %v45_v7 = vpop.permute.xlu1 %44 }
  0x75   :  { %v26_v10 = vmul.f32 %v25_v8, %v18_v6  ;;  %v52_v18 = vmul.f32 %v51_v12, %v45_v7 }
  0x77   :  { %v28_v16 = vadd.f32 %v26_v10, %v14_v9 }
  0x7d   :  { %v32_v14 = vpop.permute.xlu0 %31  ;;  %v58_v15 = vpop.permute.xlu1 %57 }
  0x7e   :  { %v39_v17 = vmul.f32 %v38_v11, %v32_v14  ;;  %v65_v20 = vmul.f32 %v64_v13, %v58_v15 }
  0x80   :  { %v41_v19 = vadd.f32 %v39_v17, %v28_v16 }
  0x82   :  { %v54_v21 = vadd.f32 %v52_v18, %v41_v19 }
  0x84   :  { %v624_v22 = vadd.f32 %v65_v20, %v54_v21 }
  0x86   :  { %v483_v23 = vmul.f32 -1.442695, %v624_v22 }
  0x88   :  { %525 = vpow2.f32 %v483_v23 }
  0x8e   :  { %v526_v24 = vpop.eup %525 }
  0x8f   :  { %v74_v25 = vadd.f32 1.0, %v526_v24 }
  0x91   :  { %527 = vrcp.f32 %v74_v25  ;;  %v86_v29 = vand.u32 2147483648, %v74_v25  ;;  %v84_v31 = vand.u32 2147483647, %v74_v25  ;;  %vm80_vm1 = vweird.f32 %v74_v25 }
  0x93   :  { %v87_v33 = vor.u32 1.1754944e-38, %v86_v29  ;;  %vm85_vm3 = vcmp.eq.f32.partialorder %v84_v31, 8.507059e+37 }
  0x97   :  { %v528_v26 = vpop.eup %527 }
  0x98   :  { %v76_v27 = vmul.f32 %v528_v26, %v74_v25  ;;  %vm81_vm0 = vweird.f32 %v528_v26 }
  0x99   :  { %vm82_vm2 = vmor %vm80_vm1, %vm81_vm0 }
  0x9a   :  { %v77_v28 = vsub.f32 1.0, %v76_v27 }
  0x9c   :  { %v78_v30 = vmul.f32 %v528_v26, %v77_v28 }
  0x9e   :  { %v79_v32 = vadd.f32 %v528_v26, %v78_v30 }
  0xa0   :  { %v83_v34 = vsel %vm82_vm2, %v528_v26, %v79_v32 }
  0xa1   :  { %v88_v35 = vsel %vm85_vm3, %v87_v33, %v83_v34 }
  0xa2   :  { %106 = vperm.xlu1 %510, %v88_v35   ;;  %v90_v36 = vmul.f32 2.0, %v88_v35  ;;  %v92_v40 = vmul.f32 0.0, %v88_v35 }
  0xa4   :  { %v484_v37 = vadd.f32 -1.0, %v90_v36 }
  0xa6   :  { %94 = vrot.lane.b32.xlu2 %v484_v37, %s577_s1 }
  0xaa   :  { %514 = vset.pattern.permute.xlu1 %v575_v3 }
 0x100   :  { %v95_v38 = vpop.permute.xlu2 %94 }
 0x101   :  { %v97_v39 = vmul.f32 %v95_v38, %v88_v35 }
 0x103   :  { %99 = vrot.lane.b32.xlu2 %v97_v39, %s578_s13 }
 0x114   :  { %v107_v45 = vpop.permute.xlu1 %106 }
 0x115   :  { %v109_v46 = vmul.f32 %v107_v45, %v632_v44 }
 0x15d   :  { %v100_v41 = vpop.permute.xlu2 %99 }
 0x15e   :  { %v102_v42 = vadd.f32 %v100_v41, %v92_v40 }
 0x160   :  { %529 = vtanh.f32 %v102_v42  ;;  %v142_v14 = vrot.slane %v102_v42, 6 }
 0x166   :  { %v530_v43 = vpop.eup %529 }
 0x167   :  { %112 = vperm.xlu2 %511, %v530_v43  }
 0x16f   :  { %512 = vset.pattern.permute.xlu2 %v576_v4 }
 0x1c1   :  { %v113_v47 = vpop.permute.xlu2 %112 }
 0x1c2   :  { %v115_v48 = vmul.f32 %v113_v47, %v109_v46 }
 0x1c4   :  { %v117_v49 = vrot.slane %v115_v48, 6 }
 0x1c6   :  { %v119_v50 = vadd.f32 %v117_v49, %v624_v22 }
 0x1c8   :  { %v485_v51 = vmul.f32 -1.442695, %v119_v50 }
 0x1ca   :  { %531 = vpow2.f32 %v485_v51 }
 0x1d0   :  { %v532_v52 = vpop.eup %531 }
 0x1d1   :  { %v123_v53 = vadd.f32 1.0, %v532_v52 }
 0x1d3   :  { %533 = vrcp.f32 %v123_v53  ;;  %v135_v57 = vand.u32 2147483648, %v123_v53  ;;  %v133_v59 = vand.u32 2147483647, %v123_v53  ;;  %vm129_vm5 = vweird.f32 %v123_v53 }
 0x1d5   :  { %v136_v61 = vor.u32 1.1754944e-38, %v135_v57  ;;  %vm134_vm7 = vcmp.eq.f32.partialorder %v133_v59, 8.507059e+37 }
 0x1d9   :  { %v534_v54 = vpop.eup %533 }
 0x1da   :  { %v125_v55 = vmul.f32 %v534_v54, %v123_v53  ;;  %vm130_vm4 = vweird.f32 %v534_v54 }
 0x1db   :  { %vm131_vm6 = vmor %vm129_vm5, %vm130_vm4 }
 0x1dc   :  { %v126_v56 = vsub.f32 1.0, %v125_v55  ;;  %v12_v55 = vld [vmem:[%s691_s0 + $0x8] sm:$0xff]  ;;  %s579_s0 = smov 2  }
 0x1de   :  { %v127_v58 = vmul.f32 %v534_v54, %v126_v56 }
 0x1e0   :  { %v128_v60 = vadd.f32 %v534_v54, %v127_v58 }
 0x1e2   :  { %v132_v62 = vsel %vm131_vm6, %v534_v54, %v128_v60 }
 0x1e3   :  { %v137_v63 = vsel %vm134_vm7, %v136_v61, %v132_v62 }
 0x1e4   :  { %158 = vperm.xlu2 %512, %v137_v63   ;;  %v139_v1 = vmul.f32 2.0, %v137_v63  ;;  %v144_v15 = vmul.f32 %v142_v14, %v137_v63 }
 0x1e6   :  { %v486_v6 = vadd.f32 -1.0, %v139_v1 }
 0x1e8   :  { %146 = vrot.lane.b32.xlu0 %v486_v6, %s577_s1 }
 0x1ec   :  { %515 = vset.pattern.permute.xlu2 %v573_v0 }
 0x23e   :  { %v159_v19 = vpop.permute.xlu2 %158 }
 0x23f   :  { %v161_v20 = vmul.f32 %v159_v19, %v632_v44 }
 0x25a   :  { %v147_v7 = vpop.permute.xlu0 %146 }
 0x25b   :  { %v149_v10 = vmul.f32 %v147_v7, %v137_v63 }
 0x25d   :  { %151 = vrot.lane.b32.xlu1 %v149_v10, %s578_s13 }
 0x2cf   :  { %v152_v16 = vpop.permute.xlu1 %151 }
 0x2d0   :  { %v154_v17 = vadd.f32 %v152_v16, %v144_v15 }
 0x2d2   :  { %535 = vtanh.f32 %v154_v17  ;;  %v194_v42 = vrot.slane %v154_v17, 6 }
 0x2d8   :  { %v536_v18 = vpop.eup %535 }
 0x2d9   :  { %164 = vperm.xlu0 %508, %v536_v18  }
 0x2e1   :  { %513 = vset.pattern.permute.xlu0 %v576_v4 }
 0x34b   :  { %v165_v21 = vpop.permute.xlu0 %164 }
 0x34c   :  { %v167_v23 = vmul.f32 %v165_v21, %v161_v20 }
 0x34e   :  { %v169_v24 = vrot.slane %v167_v23, 6 }
 0x350   :  { %v171_v0 = vadd.f32 %v169_v24, %v624_v22 }
 0x352   :  { %v487_v25 = vmul.f32 -1.442695, %v171_v0 }
 0x354   :  { %537 = vpow2.f32 %v487_v25 }
 0x35a   :  { %v538_v26 = vpop.eup %537 }
 0x35b   :  { %v175_v27 = vadd.f32 1.0, %v538_v26 }
 0x35d   :  { %539 = vrcp.f32 %v175_v27  ;;  %v187_v31 = vand.u32 2147483648, %v175_v27  ;;  %v185_v33 = vand.u32 2147483647, %v175_v27  ;;  %vm181_vm9 = vweird.f32 %v175_v27 }
 0x35f   :  { %v188_v35 = vor.u32 1.1754944e-38, %v187_v31  ;;  %vm186_vm11 = vcmp.eq.f32.partialorder %v185_v33, 8.507059e+37 }
 0x363   :  { %v540_v28 = vpop.eup %539 }
 0x364   :  { %v177_v29 = vmul.f32 %v540_v28, %v175_v27  ;;  %vm182_vm8 = vweird.f32 %v540_v28 }
 0x365   :  { %vm183_vm10 = vmor %vm181_vm9, %vm182_vm8 }
 0x366   :  { %v178_v30 = vsub.f32 1.0, %v177_v29 }
 0x368   :  { %v179_v32 = vmul.f32 %v540_v28, %v178_v30 }
 0x36a   :  { %v180_v34 = vadd.f32 %v540_v28, %v179_v32 }
 0x36c   :  { %v184_v36 = vsel %vm183_vm10, %v540_v28, %v180_v34 }
 0x36d   :  { %v189_v37 = vsel %vm186_vm11, %v188_v35, %v184_v36 }
 0x36e   :  { %210 = vperm.xlu0 %513, %v189_v37   ;;  %v191_v38 = vmul.f32 2.0, %v189_v37  ;;  %v196_v43 = vmul.f32 %v194_v42, %v189_v37 }
 0x370   :  { %v488_v39 = vadd.f32 -1.0, %v191_v38 }
 0x372   :  { %198 = vrot.lane.b32.xlu1 %v488_v39, %s577_s1 }
 0x376   :  { %516 = vset.pattern.permute.xlu0 %v575_v3 }
 0x377   :  { %35 = vperm.xlu0 %516, %v12_v55  }
 0x3e0   :  { %v211_v48 = vpop.permute.xlu0 %210 }
 0x3e1   :  { %v213_v49 = vmul.f32 %v211_v48, %v632_v44 }
 0x3e4   :  { %v199_v40 = vpop.permute.xlu1 %198 }
 0x3e5   :  { %v201_v41 = vmul.f32 %v199_v40, %v189_v37 }
 0x3e7   :  { %203 = vrot.lane.b32.xlu2 %v201_v41, %s578_s13 }
 0x3e9   :  { %v36_v0 = vpop.permute.xlu0 %35 }
 0x3ea   :  { %v40_v26 = vmul.f32 %v38_v11, %v36_v0 }
 0x441   :  { %v204_v45 = vpop.permute.xlu2 %203 }
 0x442   :  { %v206_v46 = vadd.f32 %v204_v45, %v196_v43 }
 0x444   :  { %541 = vtanh.f32 %v206_v46  ;;  %v246_v16 = vrot.slane %v206_v46, 6 }
 0x44a   :  { %v542_v47 = vpop.eup %541 }
 0x44b   :  { %216 = vperm.xlu1 %514, %v542_v47  }
 0x453   :  { %517 = vset.pattern.permute.xlu1 %v574_v2 }
 0x4bd   :  { %v217_v50 = vpop.permute.xlu1 %216 }
 0x4be   :  { %v219_v51 = vmul.f32 %v217_v50, %v213_v49 }
 0x4c0   :  { %v221_v52 = vrot.slane %v219_v51, 6 }
 0x4c2   :  { %v223_v53 = vadd.f32 %v221_v52, %v624_v22 }
 0x4c4   :  { %v489_v54 = vmul.f32 -1.442695, %v223_v53 }
 0x4c6   :  { %543 = vpow2.f32 %v489_v54 }
 0x4cc   :  { %v544_v56 = vpop.eup %543 }
 0x4cd   :  { %v227_v57 = vadd.f32 1.0, %v544_v56 }
 0x4cf   :  { %545 = vrcp.f32 %v227_v57  ;;  %v239_v60 = vand.u32 2147483648, %v227_v57  ;;  %v237_v62 = vand.u32 2147483647, %v227_v57  ;;  %vm233_vm13 = vweird.f32 %v227_v57 }
 0x4d1   :  { %v240_v22 = vor.u32 1.1754944e-38, %v239_v60  ;;  %vm238_vm15 = vcmp.eq.f32.partialorder %v237_v62, 8.507059e+37 }
 0x4d5   :  { %v546_v58 = vpop.eup %545 }
 0x4d6   :  { %v229_v2 = vmul.f32 %v546_v58, %v227_v57  ;;  %vm234_vm12 = vweird.f32 %v546_v58 }
 0x4d7   :  { %vm235_vm14 = vmor %vm233_vm13, %vm234_vm12 }
 0x4d8   :  { %v230_v59 = vsub.f32 1.0, %v229_v2 }
 0x4da   :  { %v231_v61 = vmul.f32 %v546_v58, %v230_v59 }
 0x4dc   :  { %v232_v63 = vadd.f32 %v546_v58, %v231_v61 }
 0x4de   :  { %v236_v1 = vsel %vm235_vm14, %v546_v58, %v232_v63 }
 0x4df   :  { %v241_v6 = vsel %vm238_vm15, %v240_v22, %v236_v1 }
 0x4e0   :  { %v243_v7 = vmul.f32 2.0, %v241_v6  ;;  %v248_v17 = vmul.f32 %v246_v16, %v241_v6 }
 0x4e2   :  { %v490_v10 = vadd.f32 -1.0, %v243_v7 }
 0x4e4   :  { %250 = vrot.lane.b32.xlu2 %v490_v10, %s577_s1 }
 0x4ec   :  { %22 = vperm.xlu2 %515, %v12_v55  }
 0x4f4   :  { %518 = vset.pattern.permute.xlu2 %v576_v4 }
 0x4f5   :  { %262 = vperm.xlu2 %518, %v241_v6  }
 0x4fd   :  { %520 = vset.pattern.permute.xlu2 %v575_v3 }
 0x53e   :  { %v251_v14 = vpop.permute.xlu2 %250 }
 0x53f   :  { %v253_v15 = vmul.f32 %v251_v14, %v241_v6 }
 0x541   :  { %255 = vrot.lane.b32.xlu1 %v253_v15, %s578_s13 }
 0x546   :  { %v23_v21 = vpop.permute.xlu2 %22 }
 0x547   :  { %v27_v24 = vmul.f32 %v25_v8, %v23_v21 }
 0x549   :  { %48 = vperm.xlu1 %517, %v12_v55   ;;  %v29_v25 = vadd.f32 %v27_v24, %v14_v9 }
 0x54b   :  { %v42_v29 = vadd.f32 %v40_v26, %v29_v25 }
 0x54f   :  { %v263_v27 = vpop.permute.xlu2 %262 }
 0x550   :  { %v265_v31 = vmul.f32 %v263_v27, %v632_v44 }
 0x551   :  { %519 = vset.pattern.permute.xlu1 %v576_v4 }
 0x552   :  { %61 = vperm.xlu1 %519, %v12_v55  }
 0x55a   :  { %523 = vset.pattern.permute.xlu1 %v575_v3 }
 0x5b3   :  { %v256_v18 = vpop.permute.xlu1 %255 }
 0x5b4   :  { %v258_v19 = vadd.f32 %v256_v18, %v248_v17 }
 0x5b6   :  { %547 = vtanh.f32 %v258_v19  ;;  %v298_v51 = vrot.slane %v258_v19, 6 }
 0x5bb   :  { %v49_v23 = vpop.permute.xlu1 %48 }
 0x5bc   :  { %v548_v20 = vpop.eup %547  ;;  %v53_v28 = vmul.f32 %v51_v12, %v49_v23 }
 0x5bd   :  { %268 = vperm.xlu2 %520, %v548_v20  }
 0x5be   :  { %v55_v32 = vadd.f32 %v53_v28, %v42_v29 }
 0x5c4   :  { %v62_v30 = vpop.permute.xlu1 %61 }
 0x5c5   :  { %521 = vset.pattern.permute.xlu2 %v576_v4  ;;  %v66_v33 = vmul.f32 %v64_v13, %v62_v30 }
 0x5c7   :  { %v669_v35 = vadd.f32 %v66_v33, %v55_v32 }
 0x617   :  { %v269_v8 = vpop.permute.xlu2 %268 }
 0x618   :  { %v271_v34 = vmul.f32 %v269_v8, %v265_v31 }
 0x61a   :  { %v273_v9 = vrot.slane %v271_v34, 6 }
 0x61c   :  { %v275_v36 = vadd.f32 %v273_v9, %v669_v35 }
 0x61e   :  { %v491_v11 = vmul.f32 -1.442695, %v275_v36 }
 0x620   :  { %549 = vpow2.f32 %v491_v11 }
 0x626   :  { %v550_v37 = vpop.eup %549 }
 0x627   :  { %v279_v38 = vadd.f32 1.0, %v550_v37 }
 0x629   :  { %551 = vrcp.f32 %v279_v38  ;;  %v291_v41 = vand.u32 2147483648, %v279_v38  ;;  %v289_v5 = vand.u32 2147483647, %v279_v38  ;;  %vm285_vm1 = vweird.f32 %v279_v38 }
 0x62b   :  { %v292_v43 = vor.u32 1.1754944e-38, %v291_v41  ;;  %vm290_vm3 = vcmp.eq.f32.partialorder %v289_v5, 8.507059e+37 }
 0x62f   :  { %v552_v12 = vpop.eup %551 }
 0x630   :  { %v281_v39 = vmul.f32 %v552_v12, %v279_v38  ;;  %vm286_vm0 = vweird.f32 %v552_v12 }
 0x631   :  { %vm287_vm2 = vmor %vm285_vm1, %vm286_vm0  ;;  %vm477_vm0 = vcmask 7174  }
 0x632   :  { %v282_v40 = vsub.f32 1.0, %v281_v39 }
 0x634   :  { %v283_v42 = vmul.f32 %v552_v12, %v282_v40 }
 0x636   :  { %v284_v13 = vadd.f32 %v552_v12, %v283_v42 }
 0x638   :  { %v288_v45 = vsel %vm287_vm2, %v552_v12, %v284_v13 }
 0x639   :  { %v293_v46 = vsel %vm290_vm3, %v292_v43, %v288_v45 }
 0x63a   :  { %314 = vperm.xlu2 %521, %v293_v46   ;;  %v295_v47 = vmul.f32 2.0, %v293_v46  ;;  %v300_v52 = vmul.f32 %v298_v51, %v293_v46 }
 0x63c   :  { %v492_v48 = vadd.f32 -1.0, %v295_v47 }
 0x63e   :  { %302 = vrot.lane.b32.xlu0 %v492_v48, %s577_s1 }
 0x694   :  { %v315_v56 = vpop.permute.xlu2 %314 }
 0x695   :  { %v317_v57 = vmul.f32 %v315_v56, %v632_v44 }
 0x6b0   :  { %v303_v49 = vpop.permute.xlu0 %302 }
 0x6b1   :  { %v305_v50 = vmul.f32 %v303_v49, %v293_v46 }
 0x6b3   :  { %307 = vrot.lane.b32.xlu1 %v305_v50, %s578_s13 }
 0x725   :  { %v308_v53 = vpop.permute.xlu1 %307 }
 0x726   :  { %v310_v54 = vadd.f32 %v308_v53, %v300_v52 }
 0x728   :  { %553 = vtanh.f32 %v310_v54  ;;  %v350_v23 = vrot.slane %v310_v54, 6 }
 0x72e   :  { %v554_v55 = vpop.eup %553 }
 0x72f   :  { %320 = vperm.xlu0 %516, %v554_v55  }
 0x737   :  { %522 = vset.pattern.permute.xlu0 %v576_v4 }
 0x7a1   :  { %v321_v58 = vpop.permute.xlu0 %320 }
 0x7a2   :  { %v323_v2 = vmul.f32 %v321_v58, %v317_v57 }
 0x7a4   :  { %v325_v59 = vrot.slane %v323_v2, 6 }
 0x7a6   :  { %v327_v60 = vadd.f32 %v325_v59, %v669_v35 }
 0x7a8   :  { %v493_v61 = vmul.f32 -1.442695, %v327_v60 }
 0x7aa   :  { %555 = vpow2.f32 %v493_v61 }
 0x7b0   :  { %v556_v62 = vpop.eup %555 }
 0x7b1   :  { %v331_v63 = vadd.f32 1.0, %v556_v62 }
 0x7b3   :  { %557 = vrcp.f32 %v331_v63  ;;  %v343_v7 = vand.u32 2147483648, %v331_v63  ;;  %v341_v4 = vand.u32 2147483647, %v331_v63  ;;  %vm337_vm5 = vweird.f32 %v331_v63 }
 0x7b5   :  { %v344_v15 = vor.u32 1.1754944e-38, %v343_v7  ;;  %vm342_vm7 = vcmp.eq.f32.partialorder %v341_v4, 8.507059e+37 }
 0x7b9   :  { %v558_v22 = vpop.eup %557 }
 0x7ba   :  { %v333_v1 = vmul.f32 %v558_v22, %v331_v63  ;;  %vm338_vm4 = vweird.f32 %v558_v22 }
 0x7bb   :  { %vm339_vm6 = vmor %vm337_vm5, %vm338_vm4 }
 0x7bc   :  { %v334_v6 = vsub.f32 1.0, %v333_v1 }
 0x7be   :  { %v335_v10 = vmul.f32 %v558_v22, %v334_v6 }
 0x7c0   :  { %v336_v14 = vadd.f32 %v558_v22, %v335_v10 }
 0x7c2   :  { %v340_v16 = vsel %vm339_vm6, %v558_v22, %v336_v14 }
 0x7c3   :  { %v345_v17 = vsel %vm342_vm7, %v344_v15, %v340_v16 }
 0x7c4   :  { %366 = vperm.xlu0 %522, %v345_v17   ;;  %v347_v18 = vmul.f32 2.0, %v345_v17  ;;  %v352_v24 = vmul.f32 %v350_v23, %v345_v17 }
 0x7c6   :  { %v494_v19 = vadd.f32 -1.0, %v347_v18 }
 0x7c8   :  { %354 = vrot.lane.b32.xlu1 %v494_v19, %s577_s1 }
 0x7cc   :  { %524 = vset.pattern.permute.xlu0 %v575_v3 }
 0x836   :  { %v367_v27 = vpop.permute.xlu0 %366 }
 0x837   :  { %v369_v28 = vmul.f32 %v367_v27, %v632_v44 }
 0x83a   :  { %v355_v20 = vpop.permute.xlu1 %354 }
 0x83b   :  { %v357_v21 = vmul.f32 %v355_v20, %v345_v17 }
 0x83d   :  { %359 = vrot.lane.b32.xlu2 %v357_v21, %s578_s13 }
 0x897   :  { %v360_v0 = vpop.permute.xlu2 %359 }
 0x898   :  { %v362_v25 = vadd.f32 %v360_v0, %v352_v24 }
 0x89a   :  { %559 = vtanh.f32 %v362_v25  ;;  %v402_v45 = vrot.slane %v362_v25, 6 }
 0x8a0   :  { %v560_v26 = vpop.eup %559 }
 0x8a1   :  { %372 = vperm.xlu1 %523, %v560_v26  }
 0x913   :  { %v373_v29 = vpop.permute.xlu1 %372 }
 0x914   :  { %v375_v30 = vmul.f32 %v373_v29, %v369_v28 }
 0x916   :  { %v377_v31 = vrot.slane %v375_v30, 6 }
 0x918   :  { %v379_v32 = vadd.f32 %v377_v31, %v669_v35 }
 0x91a   :  { %v495_v3 = vmul.f32 -1.442695, %v379_v32 }
 0x91c   :  { %561 = vpow2.f32 %v495_v3 }
 0x922   :  { %v562_v33 = vpop.eup %561 }
 0x923   :  { %v383_v8 = vadd.f32 1.0, %v562_v33 }
 0x925   :  { %563 = vrcp.f32 %v383_v8  ;;  %v395_v11 = vand.u32 2147483648, %v383_v8  ;;  %v393_v38 = vand.u32 2147483647, %v383_v8  ;;  %vm389_vm9 = vweird.f32 %v383_v8 }
 0x927   :  { %v396_v39 = vor.u32 1.1754944e-38, %v395_v11  ;;  %vm394_vm11 = vcmp.eq.f32.partialorder %v393_v38, 8.507059e+37 }
 0x92b   :  { %v564_v34 = vpop.eup %563 }
 0x92c   :  { %v385_v9 = vmul.f32 %v564_v34, %v383_v8  ;;  %vm390_vm8 = vweird.f32 %v564_v34 }
 0x92d   :  { %vm391_vm10 = vmor %vm389_vm9, %vm390_vm8 }
 0x92e   :  { %v386_v36 = vsub.f32 1.0, %v385_v9 }
 0x930   :  { %v387_v37 = vmul.f32 %v564_v34, %v386_v36 }
 0x932   :  { %v388_v12 = vadd.f32 %v564_v34, %v387_v37 }
 0x934   :  { %v392_v40 = vsel %vm391_vm10, %v564_v34, %v388_v12 }
 0x935   :  { %v397_v41 = vsel %vm394_vm11, %v396_v39, %v392_v40 }
 0x936   :  { %v399_v42 = vmul.f32 2.0, %v397_v41  ;;  %v404_v46 = vmul.f32 %v402_v45, %v397_v41 }
 0x938   :  { %v496_v5 = vadd.f32 -1.0, %v399_v42 }
 0x93a   :  { %406 = vrot.lane.b32.xlu2 %v496_v5, %s577_s1 }
 0x942   :  { %418 = vperm.xlu2 %521, %v397_v41  }
 0x994   :  { %v407_v13 = vpop.permute.xlu2 %406 }
 0x995   :  { %v409_v43 = vmul.f32 %v407_v13, %v397_v41 }
 0x997   :  { %411 = vrot.lane.b32.xlu1 %v409_v43, %s578_s13 }
 0x99c   :  { %v419_v50 = vpop.permute.xlu2 %418 }
 0x99d   :  { %v421_v51 = vmul.f32 %v419_v50, %v632_v44 }
 0xa09   :  { %v412_v47 = vpop.permute.xlu1 %411 }
 0xa0a   :  { %v414_v48 = vadd.f32 %v412_v47, %v404_v46 }
 0xa0c   :  { %565 = vtanh.f32 %v414_v48  ;;  %v454_v14 = vrot.slane %v414_v48, 6 }
 0xa12   :  { %v566_v49 = vpop.eup %565 }
 0xa13   :  { %424 = vperm.xlu0 %524, %v566_v49  }
 0xa85   :  { %v425_v52 = vpop.permute.xlu0 %424 }
 0xa86   :  { %v427_v53 = vmul.f32 %v425_v52, %v421_v51 }
 0xa88   :  { %v429_v54 = vrot.slane %v427_v53, 6 }
 0xa8a   :  { %v431_v55 = vadd.f32 %v429_v54, %v669_v35 }
 0xa8c   :  { %v497_v56 = vmul.f32 -1.442695, %v431_v55 }
 0xa8e   :  { %567 = vpow2.f32 %v497_v56 }
 0xa94   :  { %v568_v57 = vpop.eup %567 }
 0xa95   :  { %v435_v58 = vadd.f32 1.0, %v568_v57 }
 0xa97   :  { %569 = vrcp.f32 %v435_v58  ;;  %v447_v61 = vand.u32 2147483648, %v435_v58  ;;  %v445_v63 = vand.u32 2147483647, %v435_v58  ;;  %vm441_vm13 = vweird.f32 %v435_v58 }
 0xa99   :  { %v448_v44 = vor.u32 1.1754944e-38, %v447_v61  ;;  %vm446_vm15 = vcmp.eq.f32.partialorder %v445_v63, 8.507059e+37 }
 0xa9d   :  { %v570_v2 = vpop.eup %569 }
 0xa9e   :  { %v437_v59 = vmul.f32 %v570_v2, %v435_v58  ;;  %vm442_vm12 = vweird.f32 %v570_v2 }
 0xa9f   :  { %vm443_vm14 = vmor %vm441_vm13, %vm442_vm12 }
 0xaa0   :  { %v438_v60 = vsub.f32 1.0, %v437_v59 }
 0xaa2   :  { %v439_v62 = vmul.f32 %v570_v2, %v438_v60 }
 0xaa4   :  { %v440_v22 = vadd.f32 %v570_v2, %v439_v62 }
 0xaa6   :  { %v444_v1 = vsel %vm443_vm14, %v570_v2, %v440_v22 }
 0xaa7   :  { %v449_v6 = vsel %vm446_vm15, %v448_v44, %v444_v1 }
 0xaa8   :  { %v451_v35 = vmul.f32 2.0, %v449_v6  ;;  %v456_v15 = vmul.f32 %v454_v14, %v449_v6 }
 0xaaa   :  { %v498_v7 = vadd.f32 -1.0, %v451_v35 }
 0xaac   :  { %458 = vrot.lane.b32.xlu1 %v498_v7, %s577_s1 }
 0xb1e   :  { %v459_v10 = vpop.permute.xlu1 %458 }
 0xb1f   :  { %v461_v4 = vmul.f32 %v459_v10, %v449_v6 }
 0xb21   :  { %463 = vrot.lane.b32.xlu2 %v461_v4, %s578_s13 }
 0xb7b   :  { %v464_v16 = vpop.permute.xlu2 %463 }
 0xb7c   :  { %v466_v17 = vadd.f32 %v464_v16, %v456_v15 }
 0xb7e   :  { %571 = vtanh.f32 %v466_v17 }
 0xb84   :  { %v572_v18 = vpop.eup %571 }
 0xb85   :  { %469 = vrot.lane.b32.xlu1 %v572_v18, %s579_s0 }
 0xbf7   :  { %v470_v19 = vpop.permute.xlu1 %469 }
 0xbf8   :  { %v472_v20 = vmul.f32 %v470_v19, %v449_v6 }
 0xbfa   :  { %474 = vrot.lane.b32.xlu2 %v472_v20, %s580_s16 }
 0xc54   :  { %v475_v21 = vpop.permute.xlu2 %474 }
 0xc55   :  { %478 = vst.msk [vmem:[%s693_s2 - $0x6] sm:$0xc0] %vm477_vm0, %v475_v21 }

</bundles_post_ra>
